<compile_context>
chip_gen: v7x
topology: tpu7x:2x2x1
jax: 0.10.0
libtpu: 0.0.40
codegen_flags: <defaults>
</compile_context>

<pallas_src>
import functools

import jax
import jax.numpy as jnp
from jax.experimental import pallas as pl
from jax.experimental.pallas import tpu as pltpu

EPS = 1e-5


def _pick_tile_hw(hw, w, max_pix=2048):
    """Largest spatial tile (pixels) that is lane-dense (multiple of 128), row aligned
    (multiple of W), strictly larger than one row (so the halo fits inside the
    neighbouring tile) and divides H*W exactly.  Falls back to the full plane."""
    best = None
    t = 128
    while t <= min(hw, max_pix):
        if hw % t == 0 and t % w == 0 and t > w:
            best = t
        t += 128
    return best if best is not None else hw


def conv_activation_batchnorm(x_nchw, weight_oihw, gamma, beta, eps=EPS,
                              tile_hw=None, compute_dtype=jnp.bfloat16):
    N, Cin, H, W = x_nchw.shape
    Cout, _, K, _ = weight_oihw.shape
    assert K == 3, "only kernel_size=3, padding=1 is implemented"
    HW = H * W
    thw = tile_hw if tile_hw is not None else _pick_tile_hw(HW, W)
    assert HW % thw == 0 and thw % W == 0 and thw > W, (thw, H, W)
    n_hw = HW // thw

    # ---- cheap wrapper prep: flat spatial view (free reshape), bf16 matmul inputs ----
    x_flat = x_nchw.reshape(N, Cin, HW).astype(compute_dtype)
    # weight (Cout, Cin, K, K) -> (K*K, Cout, Cin), tap index = kh*K + kw
    w_taps = jnp.transpose(weight_oihw, (2, 3, 0, 1)).reshape(K * K, Cout, Cin)
    w_taps = w_taps.astype(compute_dtype)
    # column-validity masks (periodic in the flat index because tiles are row aligned):
    #   row 0: valid for kw=0 taps (needs w >= 1); row 1: valid for kw=2 taps (w <= W-2)
    lane = jnp.arange(thw)
    wmask = jnp.stack([(lane % W != 0), (lane % W != (W - 1))]).astype(jnp.float32)

    # ---- kernel 1: in-kernel im2col (9 shifted matmuls) + ReLU + per-block stats ----
    def conv_relu_stats_kernel(xc_ref, xp_ref, xn_ref, w_ref, wm_ref,
                               y_ref, psum_ref, psq_ref):
        # xc/xp/xn: (1, Cin, thw) bf16  -- current / previous / next spatial tile
        # w_ref   : (K*K, Cout, Cin) bf16        wm_ref: (2, thw) f32
        # y_ref   : (1, Cout, thw) f32           psum/psq: (1, 1, Cout, 1) f32
        xall = jnp.concatenate([xp_ref[0], xc_ref[0], xn_ref[0]], axis=-1)  # (Cin, 3*thw)
        p0 = pl.program_id(1) * thw
        p = jax.lax.broadcasted_iota(jnp.int32, (1, thw), 1) + p0           # abs flat idx
        hm_top = jnp.where(p >= W, 1.0, 0.0).astype(jnp.float32)            # h >= 1
        hm_bot = jnp.where(p < (H - 1) * W, 1.0, 0.0).astype(jnp.float32)   # h <= H-2
        wm_l = wm_ref[0:1, :]
        wm_r = wm_ref[1:2, :]

        acc = jnp.zeros((Cout, thw), jnp.float32)
        for kh in range(K):
            for kw in range(K):
                d = (kh - 1) * W + (kw - 1)                 # flat shift of this tap
                win = xall[:, thw + d: 2 * thw + d]         # (Cin, thw) shifted window
                m = None
                if kh == 0:
                    m = hm_top
                elif kh == 2:
                    m = hm_bot
                if kw == 0:
                    m = wm_l if m is None else m * wm_l
                elif kw == 2:
                    m = wm_r if m is None else m * wm_r
                if m is not None:                           # zero-padding semantics
                    win = win * m.astype(win.dtype)
                acc = acc + jnp.dot(w_ref[kh * K + kw], win,
                                    preferred_element_type=jnp.float32)

        relu = jnp.maximum(acc, 0.0)
        y_ref[...] = relu[None].astype(y_ref.dtype)

        # per-block partial BN stats via MXU dots against a ones column (keeps XLU free)
        ones_col = jnp.ones((thw, 1), jnp.float32)
        psum_ref[...] = jnp.dot(relu, ones_col,
                                preferred_element_type=jnp.float32)[None, None]
        psq_ref[...] = jnp.dot(relu * relu, ones_col,
                               preferred_element_type=jnp.float32)[None, None]

    itemsize = jnp.dtype(compute_dtype).itemsize
    step_bytes = 2 * (3 * Cin * thw * itemsize + Cout * thw * 4) \
        + K * K * Cout * Cin * itemsize + 2 * thw * 4 + 4 * Cout * 4
    vmem_limit = int(min(max(4 * step_bytes, 32 * 1024 * 1024), 60 * 1024 * 1024))

    x_center_spec = pl.BlockSpec((1, Cin, thw), lambda n, h: (n, 0, h))
    x_prev_spec = pl.BlockSpec((1, Cin, thw),
                               lambda n, h: (n, 0, jnp.maximum(h - 1, 0)))
    x_next_spec = pl.BlockSpec((1, Cin, thw),
                               lambda n, h: (n, 0, jnp.minimum(h + 1, n_hw - 1)))

    y, psum, psq = pl.pallas_call(
        conv_relu_stats_kernel,
        out_shape=(
            jax.ShapeDtypeStruct((N, Cout, HW), jnp.float32),
            jax.ShapeDtypeStruct((N, n_hw, Cout, 1), jnp.float32),
            jax.ShapeDtypeStruct((N, n_hw, Cout, 1), jnp.float32),
        ),
        grid_spec=pltpu.PrefetchScalarGridSpec(
            num_scalar_prefetch=0,
            grid=(N, n_hw),
            in_specs=[
                x_center_spec, x_prev_spec, x_next_spec,
                pl.BlockSpec((K * K, Cout, Cin), lambda n, h: (0, 0, 0)),
                pl.BlockSpec((2, thw), lambda n, h: (0, 0)),
            ],
            out_specs=[
                pl.BlockSpec((1, Cout, thw), lambda n, h: (n, 0, h)),
                pl.BlockSpec((1, 1, Cout, 1), lambda n, h: (n, h, 0, 0)),
                pl.BlockSpec((1, 1, Cout, 1), lambda n, h: (n, h, 0, 0)),
            ],
        ),
        compiler_params=pltpu.CompilerParams(
            dimension_semantics=("parallel", "parallel"),
            vmem_limit_bytes=vmem_limit),
    )(x_flat, x_flat, x_flat, w_taps, wmask)

    # ---- tiny glue: combine per-block partials into BN scale / shift (training stats) ----
    count = float(N * HW)
    csum = jnp.sum(psum, axis=(0, 1))[:, 0]
    csq = jnp.sum(psq, axis=(0, 1))[:, 0]
    mean = csum / count
    var = jnp.maximum(csq / count - mean * mean, 0.0)     # biased variance, clamped >= 0
    inv_std = jax.lax.rsqrt(var + eps)
    scale = (gamma * inv_std).reshape(Cout, 1).astype(jnp.float32)
    shift = (beta - mean * gamma * inv_std).reshape(Cout, 1).astype(jnp.float32)

    # ---- kernel 2: elementwise BN affine apply (y buffer aliased to the output) ----
    def bn_apply_kernel(y_ref, scale_ref, shift_ref, o_ref):
        o_ref[...] = y_ref[...] * scale_ref[...] + shift_ref[...]

    out = pl.pallas_call(
        bn_apply_kernel,
        out_shape=jax.ShapeDtypeStruct((N, Cout, HW), jnp.float32),
        grid_spec=pltpu.PrefetchScalarGridSpec(
            num_scalar_prefetch=0,
            grid=(N, n_hw),
            in_specs=[
                pl.BlockSpec((1, Cout, thw), lambda n, h: (n, 0, h)),
                pl.BlockSpec((Cout, 1), lambda n, h: (0, 0)),
                pl.BlockSpec((Cout, 1), lambda n, h: (0, 0)),
            ],
            out_specs=pl.BlockSpec((1, Cout, thw), lambda n, h: (n, 0, h)),
        ),
        input_output_aliases={0: 0},     # overwrite y in place
        compiler_params=pltpu.CompilerParams(
            dimension_semantics=("parallel", "parallel")),
    )(y, scale, shift)

    # flat spatial -> NCHW is a free, contiguous reshape (no transpose pass)
    return out.reshape(N, Cout, H, W)


def _reference(x, weight, gamma, beta, eps=EPS):
    """Pure-JAX f32 reference matching the PyTorch forward (training-mode BN)."""
    conv = jax.lax.conv_general_dilated(
        x, weight, window_strides=(1, 1), padding=((1, 1), (1, 1)),
        dimension_numbers=("NCHW", "OIHW", "NCHW"))
    relu = jnp.maximum(conv, 0.0)
    m = relu.mean(axis=(0, 2, 3), keepdims=True)
    v = relu.var(axis=(0, 2, 3), keepdims=True)            # biased
    xhat = (relu - m) / jnp.sqrt(v + eps)
    return xhat * gamma[None, :, None, None] + beta[None, :, None, None]


if __name__ == "__main__":
    N, Cin, Cout, H, W = 2, 4, 8, 16, 16

    key = jax.random.PRNGKey(0)
    k1, k2, k3, k4 = jax.random.split(key, 4)
    x = jax.random.normal(k1, (N, Cin, H, W), dtype=jnp.float32)
    weight = 0.1 * jax.random.normal(k2, (Cout, Cin, 3, 3), dtype=jnp.float32)
    gamma = 1.0 + 0.1 * jax.random.normal(k3, (Cout,), dtype=jnp.float32)
    beta = 0.1 * jax.random.normal(k4, (Cout,), dtype=jnp.float32)

    # tile_hw=128 -> 2 spatial tiles per image, exercising the halo / multi-tile path.
    fwd = jax.jit(functools.partial(conv_activation_batchnorm, tile_hw=128))
    out = jax.block_until_ready(fwd(x, weight, gamma, beta))

    ref = _reference(x, weight, gamma, beta)
    assert out.shape == (N, Cout, H, W), out.shape
    # tolerance accounts for bf16 MXU inputs (compute_dtype=jnp.float32 gives ~1e-5)
    assert jnp.allclose(out, ref, rtol=3e-2, atol=3e-2), \
        float(jnp.max(jnp.abs(out - ref)))

    print("KERNEL_OK")
</pallas_src>

<mosaic_0001>
module attributes {stable_mosaic.version = 11 : i64} {
  func.func @conv_relu_stats_kernel(%arg0: i32, %arg1: i32, %arg2: memref<1x4x128xbf16, #tpu.memory_space<vmem>>, %arg3: memref<1x4x128xbf16, #tpu.memory_space<vmem>>, %arg4: memref<1x4x128xbf16, #tpu.memory_space<vmem>>, %arg5: memref<9x8x4xbf16, #tpu.memory_space<vmem>>, %arg6: memref<2x128xf32, #tpu.memory_space<vmem>>, %arg7: memref<1x8x128xf32, #tpu.memory_space<vmem>>, %arg8: memref<1x1x8x1xf32, #tpu.memory_space<vmem>>, %arg9: memref<1x1x8x1xf32, #tpu.memory_space<vmem>>) attributes {dimension_semantics = [#tpu.dimension_semantics<parallel>, #tpu.dimension_semantics<parallel>], iteration_bounds = array<i64: 2, 2>, scalar_prefetch = 0 : i64, scratch_operands = 0 : i64, tpu.core_type = #tpu.core_type<tc>, window_params = [{transform_indices = @transform_0, window_bounds = array<i64: 1, 4, 128>}, {transform_indices = @transform_1, window_bounds = array<i64: 1, 4, 128>}, {transform_indices = @transform_2, window_bounds = array<i64: 1, 4, 128>}, {pipeline_mode = #tpu.pipeline_mode<synchronous>, transform_indices = @transform_3, window_bounds = array<i64: 9, 8, 4>}, {pipeline_mode = #tpu.pipeline_mode<synchronous>, transform_indices = @transform_4, window_bounds = array<i64: 2, 128>}, {transform_indices = @transform_5, window_bounds = array<i64: 1, 8, 128>}, {transform_indices = @transform_6, window_bounds = array<i64: 1, 1, 8, 1>}, {transform_indices = @transform_7, window_bounds = array<i64: 1, 1, 8, 1>}]} {
    %c0 = arith.constant 0 : index
    %c0_0 = arith.constant 0 : index
    %c0_1 = arith.constant 0 : index
    %0 = vector.load %arg3[%c0, %c0_0, %c0_1] : memref<1x4x128xbf16, #tpu.memory_space<vmem>>, vector<1x4x128xbf16>
    %1 = vector.shape_cast %0 : vector<1x4x128xbf16> to vector<4x128xbf16>
    %c0_2 = arith.constant 0 : index
    %c0_3 = arith.constant 0 : index
    %c0_4 = arith.constant 0 : index
    %2 = vector.load %arg2[%c0_2, %c0_3, %c0_4] : memref<1x4x128xbf16, #tpu.memory_space<vmem>>, vector<1x4x128xbf16>
    %3 = vector.shape_cast %2 : vector<1x4x128xbf16> to vector<4x128xbf16>
    %c0_5 = arith.constant 0 : index
    %c0_6 = arith.constant 0 : index
    %c0_7 = arith.constant 0 : index
    %4 = vector.load %arg4[%c0_5, %c0_6, %c0_7] : memref<1x4x128xbf16, #tpu.memory_space<vmem>>, vector<1x4x128xbf16>
    %5 = vector.shape_cast %4 : vector<1x4x128xbf16> to vector<4x128xbf16>
    %6 = tpu.concatenate %1, %3, %5 in 1 : vector<4x128xbf16>, vector<4x128xbf16>, vector<4x128xbf16> -> vector<4x384xbf16>
    %c128_i32 = arith.constant 128 : i32
    %7 = arith.muli %arg1, %c128_i32 : i32
    %8 = tpu.iota {dimensions = array<i32: 1>} : vector<1x128xi32>
    %9 = vector.broadcast %7 : i32 to vector<1x128xi32>
    %10 = arith.addi %8, %9 : vector<1x128xi32>
    %c16_i32 = arith.constant 16 : i32
    %11 = vector.broadcast %c16_i32 : i32 to vector<1x128xi32>
    %12 = arith.cmpi sge, %10, %11 : vector<1x128xi32>
    %cst = arith.constant 1.000000e+00 : f32
    %cst_8 = arith.constant 0.000000e+00 : f32
    %13 = vector.broadcast %cst : f32 to vector<1x128xf32>
    %14 = vector.broadcast %cst_8 : f32 to vector<1x128xf32>
    %15 = arith.select %12, %13, %14 : vector<1x128xi1>, vector<1x128xf32>
    %c240_i32 = arith.constant 240 : i32
    %16 = vector.broadcast %c240_i32 : i32 to vector<1x128xi32>
    %17 = arith.cmpi slt, %10, %16 : vector<1x128xi32>
    %cst_9 = arith.constant 1.000000e+00 : f32
    %cst_10 = arith.constant 0.000000e+00 : f32
    %18 = vector.broadcast %cst_9 : f32 to vector<1x128xf32>
    %19 = vector.broadcast %cst_10 : f32 to vector<1x128xf32>
    %20 = arith.select %17, %18, %19 : vector<1x128xi1>, vector<1x128xf32>
    %c0_11 = arith.constant 0 : index
    %c0_12 = arith.constant 0 : index
    %21 = vector.load %arg6[%c0_11, %c0_12] : memref<2x128xf32, #tpu.memory_space<vmem>>, vector<1x128xf32>
    %c1 = arith.constant 1 : index
    %c0_13 = arith.constant 0 : index
    %22 = vector.load %arg6[%c1, %c0_13] : memref<2x128xf32, #tpu.memory_space<vmem>>, vector<1x128xf32>
    %cst_14 = arith.constant 0.000000e+00 : f32
    %23 = vector.broadcast %cst_14 : f32 to vector<8x128xf32>
    %24 = vector.extract_strided_slice %6 {offsets = [0, 111], sizes = [4, 128], strides = [1, 1]} : vector<4x384xbf16> to vector<4x128xbf16>
    %25 = arith.mulf %15, %21 : vector<1x128xf32>
    %26 = arith.truncf %25 : vector<1x128xf32> to vector<1x128xbf16>
    %27 = vector.broadcast %26 : vector<1x128xbf16> to vector<4x128xbf16>
    %28 = arith.mulf %24, %27 : vector<4x128xbf16>
    %c0_15 = arith.constant 0 : index
    %c0_16 = arith.constant 0 : index
    %c0_17 = arith.constant 0 : index
    %29 = vector.load %arg5[%c0_15, %c0_16, %c0_17] : memref<9x8x4xbf16, #tpu.memory_space<vmem>>, vector<1x8x4xbf16>
    %30 = vector.shape_cast %29 : vector<1x8x4xbf16> to vector<8x4xbf16>
    %cst_18 = arith.constant dense<0.000000e+00> : vector<8x128xf32>
    %31 = tpu.matmul %30, %28, %cst_18 {dimension_numbers = #tpu.dot_dimension_numbers<[1], [0], [0], [1], [0, 0, 1, 1], [], []>} : vector<8x4xbf16>, vector<4x128xbf16>, vector<8x128xf32> -> vector<8x128xf32>
    %32 = arith.addf %23, %31 : vector<8x128xf32>
    %33 = vector.extract_strided_slice %6 {offsets = [0, 112], sizes = [4, 128], strides = [1, 1]} : vector<4x384xbf16> to vector<4x128xbf16>
    %34 = arith.truncf %15 : vector<1x128xf32> to vector<1x128xbf16>
    %35 = vector.broadcast %34 : vector<1x128xbf16> to vector<4x128xbf16>
    %36 = arith.mulf %33, %35 : vector<4x128xbf16>
    %c1_19 = arith.constant 1 : index
    %c0_20 = arith.constant 0 : index
    %c0_21 = arith.constant 0 : index
    %37 = vector.load %arg5[%c1_19, %c0_20, %c0_21] : memref<9x8x4xbf16, #tpu.memory_space<vmem>>, vector<1x8x4xbf16>
    %38 = vector.shape_cast %37 : vector<1x8x4xbf16> to vector<8x4xbf16>
    %cst_22 = arith.constant dense<0.000000e+00> : vector<8x128xf32>
    %39 = tpu.matmul %38, %36, %cst_22 {dimension_numbers = #tpu.dot_dimension_numbers<[1], [0], [0], [1], [0, 0, 1, 1], [], []>} : vector<8x4xbf16>, vector<4x128xbf16>, vector<8x128xf32> -> vector<8x128xf32>
    %40 = arith.addf %32, %39 : vector<8x128xf32>
    %41 = vector.extract_strided_slice %6 {offsets = [0, 113], sizes = [4, 128], strides = [1, 1]} : vector<4x384xbf16> to vector<4x128xbf16>
    %42 = arith.mulf %15, %22 : vector<1x128xf32>
    %43 = arith.truncf %42 : vector<1x128xf32> to vector<1x128xbf16>
    %44 = vector.broadcast %43 : vector<1x128xbf16> to vector<4x128xbf16>
    %45 = arith.mulf %41, %44 : vector<4x128xbf16>
    %c2 = arith.constant 2 : index
    %c0_23 = arith.constant 0 : index
    %c0_24 = arith.constant 0 : index
    %46 = vector.load %arg5[%c2, %c0_23, %c0_24] : memref<9x8x4xbf16, #tpu.memory_space<vmem>>, vector<1x8x4xbf16>
    %47 = vector.shape_cast %46 : vector<1x8x4xbf16> to vector<8x4xbf16>
    %cst_25 = arith.constant dense<0.000000e+00> : vector<8x128xf32>
    %48 = tpu.matmul %47, %45, %cst_25 {dimension_numbers = #tpu.dot_dimension_numbers<[1], [0], [0], [1], [0, 0, 1, 1], [], []>} : vector<8x4xbf16>, vector<4x128xbf16>, vector<8x128xf32> -> vector<8x128xf32>
    %49 = arith.addf %40, %48 : vector<8x128xf32>
    %50 = vector.extract_strided_slice %6 {offsets = [0, 127], sizes = [4, 128], strides = [1, 1]} : vector<4x384xbf16> to vector<4x128xbf16>
    %51 = arith.truncf %21 : vector<1x128xf32> to vector<1x128xbf16>
    %52 = vector.broadcast %51 : vector<1x128xbf16> to vector<4x128xbf16>
    %53 = arith.mulf %50, %52 : vector<4x128xbf16>
    %c3 = arith.constant 3 : index
    %c0_26 = arith.constant 0 : index
    %c0_27 = arith.constant 0 : index
    %54 = vector.load %arg5[%c3, %c0_26, %c0_27] : memref<9x8x4xbf16, #tpu.memory_space<vmem>>, vector<1x8x4xbf16>
    %55 = vector.shape_cast %54 : vector<1x8x4xbf16> to vector<8x4xbf16>
    %cst_28 = arith.constant dense<0.000000e+00> : vector<8x128xf32>
    %56 = tpu.matmul %55, %53, %cst_28 {dimension_numbers = #tpu.dot_dimension_numbers<[1], [0], [0], [1], [0, 0, 1, 1], [], []>} : vector<8x4xbf16>, vector<4x128xbf16>, vector<8x128xf32> -> vector<8x128xf32>
    %57 = arith.addf %49, %56 : vector<8x128xf32>
    %58 = vector.extract_strided_slice %6 {offsets = [0, 128], sizes = [4, 128], strides = [1, 1]} : vector<4x384xbf16> to vector<4x128xbf16>
    %c4 = arith.constant 4 : index
    %c0_29 = arith.constant 0 : index
    %c0_30 = arith.constant 0 : index
    %59 = vector.load %arg5[%c4, %c0_29, %c0_30] : memref<9x8x4xbf16, #tpu.memory_space<vmem>>, vector<1x8x4xbf16>
    %60 = vector.shape_cast %59 : vector<1x8x4xbf16> to vector<8x4xbf16>
    %cst_31 = arith.constant dense<0.000000e+00> : vector<8x128xf32>
    %61 = tpu.matmul %60, %58, %cst_31 {dimension_numbers = #tpu.dot_dimension_numbers<[1], [0], [0], [1], [0, 0, 1, 1], [], []>} : vector<8x4xbf16>, vector<4x128xbf16>, vector<8x128xf32> -> vector<8x128xf32>
    %62 = arith.addf %57, %61 : vector<8x128xf32>
    %63 = vector.extract_strided_slice %6 {offsets = [0, 129], sizes = [4, 128], strides = [1, 1]} : vector<4x384xbf16> to vector<4x128xbf16>
    %64 = arith.truncf %22 : vector<1x128xf32> to vector<1x128xbf16>
    %65 = vector.broadcast %64 : vector<1x128xbf16> to vector<4x128xbf16>
    %66 = arith.mulf %63, %65 : vector<4x128xbf16>
    %c5 = arith.constant 5 : index
    %c0_32 = arith.constant 0 : index
    %c0_33 = arith.constant 0 : index
    %67 = vector.load %arg5[%c5, %c0_32, %c0_33] : memref<9x8x4xbf16, #tpu.memory_space<vmem>>, vector<1x8x4xbf16>
    %68 = vector.shape_cast %67 : vector<1x8x4xbf16> to vector<8x4xbf16>
    %cst_34 = arith.constant dense<0.000000e+00> : vector<8x128xf32>
    %69 = tpu.matmul %68, %66, %cst_34 {dimension_numbers = #tpu.dot_dimension_numbers<[1], [0], [0], [1], [0, 0, 1, 1], [], []>} : vector<8x4xbf16>, vector<4x128xbf16>, vector<8x128xf32> -> vector<8x128xf32>
    %70 = arith.addf %62, %69 : vector<8x128xf32>
    %71 = vector.extract_strided_slice %6 {offsets = [0, 143], sizes = [4, 128], strides = [1, 1]} : vector<4x384xbf16> to vector<4x128xbf16>
    %72 = arith.mulf %20, %21 : vector<1x128xf32>
    %73 = arith.truncf %72 : vector<1x128xf32> to vector<1x128xbf16>
    %74 = vector.broadcast %73 : vector<1x128xbf16> to vector<4x128xbf16>
    %75 = arith.mulf %71, %74 : vector<4x128xbf16>
    %c6 = arith.constant 6 : index
    %c0_35 = arith.constant 0 : index
    %c0_36 = arith.constant 0 : index
    %76 = vector.load %arg5[%c6, %c0_35, %c0_36] : memref<9x8x4xbf16, #tpu.memory_space<vmem>>, vector<1x8x4xbf16>
    %77 = vector.shape_cast %76 : vector<1x8x4xbf16> to vector<8x4xbf16>
    %cst_37 = arith.constant dense<0.000000e+00> : vector<8x128xf32>
    %78 = tpu.matmul %77, %75, %cst_37 {dimension_numbers = #tpu.dot_dimension_numbers<[1], [0], [0], [1], [0, 0, 1, 1], [], []>} : vector<8x4xbf16>, vector<4x128xbf16>, vector<8x128xf32> -> vector<8x128xf32>
    %79 = arith.addf %70, %78 : vector<8x128xf32>
    %80 = vector.extract_strided_slice %6 {offsets = [0, 144], sizes = [4, 128], strides = [1, 1]} : vector<4x384xbf16> to vector<4x128xbf16>
    %81 = arith.truncf %20 : vector<1x128xf32> to vector<1x128xbf16>
    %82 = vector.broadcast %81 : vector<1x128xbf16> to vector<4x128xbf16>
    %83 = arith.mulf %80, %82 : vector<4x128xbf16>
    %c7 = arith.constant 7 : index
    %c0_38 = arith.constant 0 : index
    %c0_39 = arith.constant 0 : index
    %84 = vector.load %arg5[%c7, %c0_38, %c0_39] : memref<9x8x4xbf16, #tpu.memory_space<vmem>>, vector<1x8x4xbf16>
    %85 = vector.shape_cast %84 : vector<1x8x4xbf16> to vector<8x4xbf16>
    %cst_40 = arith.constant dense<0.000000e+00> : vector<8x128xf32>
    %86 = tpu.matmul %85, %83, %cst_40 {dimension_numbers = #tpu.dot_dimension_numbers<[1], [0], [0], [1], [0, 0, 1, 1], [], []>} : vector<8x4xbf16>, vector<4x128xbf16>, vector<8x128xf32> -> vector<8x128xf32>
    %87 = arith.addf %79, %86 : vector<8x128xf32>
    %88 = vector.extract_strided_slice %6 {offsets = [0, 145], sizes = [4, 128], strides = [1, 1]} : vector<4x384xbf16> to vector<4x128xbf16>
    %89 = arith.mulf %20, %22 : vector<1x128xf32>
    %90 = arith.truncf %89 : vector<1x128xf32> to vector<1x128xbf16>
    %91 = vector.broadcast %90 : vector<1x128xbf16> to vector<4x128xbf16>
    %92 = arith.mulf %88, %91 : vector<4x128xbf16>
    %c8 = arith.constant 8 : index
    %c0_41 = arith.constant 0 : index
    %c0_42 = arith.constant 0 : index
    %93 = vector.load %arg5[%c8, %c0_41, %c0_42] : memref<9x8x4xbf16, #tpu.memory_space<vmem>>, vector<1x8x4xbf16>
    %94 = vector.shape_cast %93 : vector<1x8x4xbf16> to vector<8x4xbf16>
    %cst_43 = arith.constant dense<0.000000e+00> : vector<8x128xf32>
    %95 = tpu.matmul %94, %92, %cst_43 {dimension_numbers = #tpu.dot_dimension_numbers<[1], [0], [0], [1], [0, 0, 1, 1], [], []>} : vector<8x4xbf16>, vector<4x128xbf16>, vector<8x128xf32> -> vector<8x128xf32>
    %96 = arith.addf %87, %95 : vector<8x128xf32>
    %cst_44 = arith.constant 0.000000e+00 : f32
    %97 = vector.broadcast %cst_44 : f32 to vector<8x128xf32>
    %98 = arith.maximumf %96, %97 : vector<8x128xf32>
    %99 = vector.shape_cast %98 : vector<8x128xf32> to vector<1x8x128xf32>
    %c0_45 = arith.constant 0 : index
    %c0_46 = arith.constant 0 : index
    %c0_47 = arith.constant 0 : index
    %100 = vector.load %arg7[%c0_45, %c0_46, %c0_47] : memref<1x8x128xf32, #tpu.memory_space<vmem>>, vector<1x8x128xf32>
    tpu.vector_store %arg7[%c0_45, %c0_46, %c0_47], %99 {strides = array<i32>} : memref<1x8x128xf32, #tpu.memory_space<vmem>>, vector<1x8x128xf32>,
    %cst_48 = arith.constant 1.000000e+00 : f32
    %101 = vector.broadcast %cst_48 : f32 to vector<128x1xf32>
    %cst_49 = arith.constant dense<0.000000e+00> : vector<8x1xf32>
    %102 = tpu.matmul %98, %101, %cst_49 {dimension_numbers = #tpu.dot_dimension_numbers<[1], [0], [0], [1], [0, 0, 1, 1], [], []>} : vector<8x128xf32>, vector<128x1xf32>, vector<8x1xf32> -> vector<8x1xf32>
    %103 = vector.shape_cast %102 : vector<8x1xf32> to vector<1x1x8x1xf32>
    %c0_50 = arith.constant 0 : index
    %c0_51 = arith.constant 0 : index
    %c0_52 = arith.constant 0 : index
    %c0_53 = arith.constant 0 : index
    %104 = vector.load %arg8[%c0_50, %c0_51, %c0_52, %c0_53] : memref<1x1x8x1xf32, #tpu.memory_space<vmem>>, vector<1x1x8x1xf32>
    tpu.vector_store %arg8[%c0_50, %c0_51, %c0_52, %c0_53], %103 {strides = array<i32>} : memref<1x1x8x1xf32, #tpu.memory_space<vmem>>, vector<1x1x8x1xf32>,
    %105 = arith.mulf %98, %98 : vector<8x128xf32>
    %cst_54 = arith.constant dense<0.000000e+00> : vector<8x1xf32>
    %106 = tpu.matmul %105, %101, %cst_54 {dimension_numbers = #tpu.dot_dimension_numbers<[1], [0], [0], [1], [0, 0, 1, 1], [], []>} : vector<8x128xf32>, vector<128x1xf32>, vector<8x1xf32> -> vector<8x1xf32>
    %107 = vector.shape_cast %106 : vector<8x1xf32> to vector<1x1x8x1xf32>
    %c0_55 = arith.constant 0 : index
    %c0_56 = arith.constant 0 : index
    %c0_57 = arith.constant 0 : index
    %c0_58 = arith.constant 0 : index
    %108 = vector.load %arg9[%c0_55, %c0_56, %c0_57, %c0_58] : memref<1x1x8x1xf32, #tpu.memory_space<vmem>>, vector<1x1x8x1xf32>
    tpu.vector_store %arg9[%c0_55, %c0_56, %c0_57, %c0_58], %107 {strides = array<i32>} : memref<1x1x8x1xf32, #tpu.memory_space<vmem>>, vector<1x1x8x1xf32>,
    return
  }
  func.func @transform_0(%arg0: i32, %arg1: i32) -> (i32, i32, i32) {
    %c0_i32 = arith.constant 0 : i32
    %c0_i32_0 = arith.constant 0 : i32
    return %arg0, %c0_i32, %arg1 : i32, i32, i32
  }
  func.func @transform_1(%arg0: i32, %arg1: i32) -> (i32, i32, i32) {
    %c1_i32 = arith.constant 1 : i32
    %0 = arith.subi %arg1, %c1_i32 : i32
    %c0_i32 = arith.constant 0 : i32
    %1 = arith.maxsi %0, %c0_i32 : i32
    %c0_i32_0 = arith.constant 0 : i32
    %c0_i32_1 = arith.constant 0 : i32
    return %arg0, %c0_i32_0, %1 : i32, i32, i32
  }
  func.func @transform_2(%arg0: i32, %arg1: i32) -> (i32, i32, i32) {
    %c1_i32 = arith.constant 1 : i32
    %0 = arith.addi %arg1, %c1_i32 : i32
    %c1_i32_0 = arith.constant 1 : i32
    %1 = arith.minsi %0, %c1_i32_0 : i32
    %c0_i32 = arith.constant 0 : i32
    %c0_i32_1 = arith.constant 0 : i32
    return %arg0, %c0_i32, %1 : i32, i32, i32
  }
  func.func @transform_3(%arg0: i32, %arg1: i32) -> (i32, i32, i32) {
    %c0_i32 = arith.constant 0 : i32
    %c0_i32_0 = arith.constant 0 : i32
    %c0_i32_1 = arith.constant 0 : i32
    %c0_i32_2 = arith.constant 0 : i32
    return %c0_i32, %c0_i32_0, %c0_i32_1 : i32, i32, i32
  }
  func.func @transform_4(%arg0: i32, %arg1: i32) -> (i32, i32) {
    %c0_i32 = arith.constant 0 : i32
    %c0_i32_0 = arith.constant 0 : i32
    %c0_i32_1 = arith.constant 0 : i32
    return %c0_i32, %c0_i32_0 : i32, i32
  }
  func.func @transform_5(%arg0: i32, %arg1: i32) -> (i32, i32, i32) {
    %c0_i32 = arith.constant 0 : i32
    %c0_i32_0 = arith.constant 0 : i32
    return %arg0, %c0_i32, %arg1 : i32, i32, i32
  }
  func.func @transform_6(%arg0: i32, %arg1: i32) -> (i32, i32, i32, i32) {
    %c0_i32 = arith.constant 0 : i32
    %c0_i32_0 = arith.constant 0 : i32
    %c0_i32_1 = arith.constant 0 : i32
    return %arg0, %arg1, %c0_i32, %c0_i32_0 : i32, i32, i32, i32
  }
  func.func @transform_7(%arg0: i32, %arg1: i32) -> (i32, i32, i32, i32) {
    %c0_i32 = arith.constant 0 : i32
    %c0_i32_0 = arith.constant 0 : i32
    %c0_i32_1 = arith.constant 0 : i32
    return %arg0, %arg1, %c0_i32, %c0_i32_0 : i32, i32, i32, i32
  }
}

module attributes {stable_mosaic.version = 11 : i64} {
  func.func @bn_apply_kernel(%arg0: i32, %arg1: i32, %arg2: memref<1x8x128xf32, #tpu.memory_space<vmem>>, %arg3: memref<8x1xf32, #tpu.memory_space<vmem>>, %arg4: memref<8x1xf32, #tpu.memory_space<vmem>>, %arg5: memref<1x8x128xf32, #tpu.memory_space<vmem>>) attributes {dimension_semantics = [#tpu.dimension_semantics<parallel>, #tpu.dimension_semantics<parallel>], iteration_bounds = array<i64: 2, 2>, scalar_prefetch = 0 : i64, scratch_operands = 0 : i64, tpu.core_type = #tpu.core_type<tc>, window_params = [{transform_indices = @transform_0, window_bounds = array<i64: 1, 8, 128>}, {pipeline_mode = #tpu.pipeline_mode<synchronous>, transform_indices = @transform_1, window_bounds = array<i64: 8, 1>}, {pipeline_mode = #tpu.pipeline_mode<synchronous>, transform_indices = @transform_2, window_bounds = array<i64: 8, 1>}, {transform_indices = @transform_3, window_bounds = array<i64: 1, 8, 128>}]} {
    %c0 = arith.constant 0 : index
    %c0_0 = arith.constant 0 : index
    %c0_1 = arith.constant 0 : index
    %0 = vector.load %arg2[%c0, %c0_0, %c0_1] : memref<1x8x128xf32, #tpu.memory_space<vmem>>, vector<1x8x128xf32>
    %c0_2 = arith.constant 0 : index
    %c0_3 = arith.constant 0 : index
    %1 = vector.load %arg3[%c0_2, %c0_3] : memref<8x1xf32, #tpu.memory_space<vmem>>, vector<8x1xf32>
    %2 = vector.shape_cast %1 : vector<8x1xf32> to vector<1x8x1xf32>
    %3 = vector.broadcast %2 : vector<1x8x1xf32> to vector<1x8x128xf32>
    %4 = arith.mulf %0, %3 : vector<1x8x128xf32>
    %c0_4 = arith.constant 0 : index
    %c0_5 = arith.constant 0 : index
    %5 = vector.load %arg4[%c0_4, %c0_5] : memref<8x1xf32, #tpu.memory_space<vmem>>, vector<8x1xf32>
    %6 = vector.shape_cast %5 : vector<8x1xf32> to vector<1x8x1xf32>
    %7 = vector.broadcast %6 : vector<1x8x1xf32> to vector<1x8x128xf32>
    %8 = arith.addf %4, %7 : vector<1x8x128xf32>
    %c0_6 = arith.constant 0 : index
    %c0_7 = arith.constant 0 : index
    %c0_8 = arith.constant 0 : index
    %9 = vector.load %arg5[%c0_6, %c0_7, %c0_8] : memref<1x8x128xf32, #tpu.memory_space<vmem>>, vector<1x8x128xf32>
    tpu.vector_store %arg5[%c0_6, %c0_7, %c0_8], %8 {strides = array<i32>} : memref<1x8x128xf32, #tpu.memory_space<vmem>>, vector<1x8x128xf32>,
    return
  }
  func.func @transform_0(%arg0: i32, %arg1: i32) -> (i32, i32, i32) {
    %c0_i32 = arith.constant 0 : i32
    %c0_i32_0 = arith.constant 0 : i32
    return %arg0, %c0_i32, %arg1 : i32, i32, i32
  }
  func.func @transform_1(%arg0: i32, %arg1: i32) -> (i32, i32) {
    %c0_i32 = arith.constant 0 : i32
    %c0_i32_0 = arith.constant 0 : i32
    %c0_i32_1 = arith.constant 0 : i32
    return %c0_i32, %c0_i32_0 : i32, i32
  }
  func.func @transform_2(%arg0: i32, %arg1: i32) -> (i32, i32) {
    %c0_i32 = arith.constant 0 : i32
    %c0_i32_0 = arith.constant 0 : i32
    %c0_i32_1 = arith.constant 0 : i32
    return %c0_i32, %c0_i32_0 : i32, i32
  }
  func.func @transform_3(%arg0: i32, %arg1: i32) -> (i32, i32, i32) {
    %c0_i32 = arith.constant 0 : i32
    %c0_i32_0 = arith.constant 0 : i32
    return %arg0, %c0_i32, %arg1 : i32, i32, i32
  }
}

</mosaic_0001>

<bundles_post_ra>
// kernel: conv_activation_batchnorm.3
= control target key start
LH: loop header
LB: loop body
LE: loop exit
PB: predicated region body
PF: predicated region fallthrough
CT: control target
= control target key end

     0   :  { %s418_s12 = smov 0   ;;  %s420_s13 = smov 0   ;;  %s472_s0 = inlined_call_operand.vmem [shape: f32[2,8,256], index: 0, kind: input, shape index: {}, may-alias: {0,3}]   ;;  %s473_s1 = inlined_call_operand.vmem [shape: f32[8,1], index: 1, kind: input, shape index: {}]   ;;  %s474_s2 = inlined_call_operand.vmem [shape: f32[8,1], index: 2, kind: input, shape index: {}]   ;;  %s475_s3 = inlined_call_operand.vmem [shape: f32[2,8,256], index: 3, kind: output, shape index: {}, may-alias: {0,3}]  }
   0x1   :  { %s422_s14 = smov 0   ;;  %s424_s15 = smov 0  }
   0x2   :  { %s426_s16 = smov 0  }
   0x3 LB: > { %s22_s17 = sadd.s32 1, %s387_s14  ;;  %s25_s18 = sadd.s32 1, %s391_s15  ;;  %s395_s16 = sphi %s426_s16, %s13_s16   ;;  %s391_s15 = sphi %s424_s15, %s479_s15   ;;  %s387_s14 = sphi %s422_s14, %s478_s14   ;;  %s383_s13 = sphi %s420_s13, %s477_s13   ;;  %s379_s12 = sphi %s418_s12, %s476_s12  }
   0x4   : > { %p23_p0 = scmp.ge.s32.totalorder %s22_s17, 2  ;;  %p308_p1 = scmp.ge.s32.totalorder %s395_s16, 1 }
   0x5   : > { %p156_p2 = scmp.lt.s32.totalorder %s395_s16, 5 }
   0x6   : > { %s481_s17 = smov (%p23_p0, %s22_s17), 0  ;;  %s483_s18 = smov (!%p23_p0, %s25_s18), %s391_s15 }
   0x7   : > { %p157_p3 = pnand %p308_p1, %p156_p2  ;;  %p27_p4 = scmp.ge.s32.totalorder %s483_s18, 2 }
   0x8   : > { %v203_v0 = vld [vmem:[%s473_s1] sm:$0xff] (!%p157_p3)  ;;  %v397_v1 = vmov (!%p157_p3), 0   ;;  %p186_p5 = scmp.lt.s32.totalorder (!%p157_p3), %s383_s13, 1  ;;  %p188_p6 = scmp.lt.s32.totalorder (!%p157_p3), %s379_s12, 1 }
   0x9   : > { %s485_s18 = smov (%p27_p4, %s483_s18), 0  ;;  %160 = sbr.rel (%p157_p3) target bundleno = 146 (0x92), region = 32 }
   0xa   : > { %356 = vset.pattern.permute.xlu0 (!%p157_p3), %v397_v1  ;;  %v210_v2 = vld [vmem:[%s474_s2] sm:$0xff] (!%p157_p3) }
   0xb   : > { %206 = vperm.xlu0 (!%p157_p3), %356, %v203_v0  }
   0xf   : > { %213 = vperm.xlu0 (!%p157_p3), %356, %v210_v2  }
  0x10   : > { %s487_s13 = smov (!%p186_p5, %s383_s13), 1  ;;  %s489_s12 = smov (!%p188_p6, %s379_s12), 1 }
  0x11   : > { %s309_s23 = sshll.u32 %s487_s13, 1 }
  0x12   : > { %s191_s24 = sadd.s32 %s309_s23, %s489_s12 }
  0x13   : > { %s310_s25 = sshll.u32 %s191_s24, 3 }
  0x14   : > { %s193_s28 = scalar_lea.vmem %s472_s0, %s310_s25  ;;  %s201_s4 = scalar_lea.vmem %s475_s3, %s310_s25 }
  0x15   : > { %v202_v4 = vld [vmem:[%s193_s28] sm:$0xff] }
  0x8a   : > { %v207_v3 = vpop.permute.xlu0 %206 }
  0x8b   : > { %v209_v5 = vmul.f32 %v207_v3, %v202_v4 }
  0x8e   : > { %v214_v6 = vpop.permute.xlu0 %213 }
  0x8f   : > { %v216_v7 = vadd.f32 %v214_v6, %v209_v5 }
  0x91   : > { %217 = vst [vmem:[%s201_s4] sm:$0xff] %v216_v7 }
  0x92 PF: > { %s13_s16 = sadd.s32 1, %s395_s16   ;;  %s476_s12 = smov %s387_s14 }
  0x93   : > { %p10_p7 = scmp.ge.s32.totalorder %s13_s16, 6   ;;  %s477_s13 = smov %s391_s15 }
  0x94   : > { %s478_s14 = smov %s481_s17  ;;  %s479_s15 = smov %s485_s18 }
  0x95   :  { %12 = sbr.rel (!%p10_p7) target bundleno = 3 (0x3), region = 62 }

// kernel: conv_activation_batchnorm.2
= control target key start
LH: loop header
LB: loop body
LE: loop exit
PB: predicated region body
PF: predicated region fallthrough
CT: control target
= control target key end

     0   :  { %s1869_s24 = smov 0   ;;  %s1871_s25 = smov 0   ;;  %s2099_s0 = inlined_call_operand.vmem [shape: bf16[2,4,256], index: 0, kind: input, shape index: {}, may-alias: {0,1,2}]   ;;  %s2100_s1 = inlined_call_operand.vmem [shape: bf16[2,4,256], index: 1, kind: input, shape index: {}, may-alias: {0,1,2}]   ;;  %s2101_s2 = inlined_call_operand.vmem [shape: bf16[2,4,256], index: 2, kind: input, shape index: {}, may-alias: {0,1,2}]   ;;  %s2102_s3 = inlined_call_operand.vmem [shape: bf16[9,8,4], index: 3, kind: input, shape index: {}]   ;;  %s2103_s4 = inlined_call_operand.vmem [shape: f32[2,128], index: 4, kind: input, shape index: {}]   ;;  %s2104_s5 = inlined_call_operand.vmem [shape: f32[2,8,256], index: 5, kind: output, shape index: {0}]   ;;  %s2105_s6 = inlined_call_operand.vmem [shape: f32[2,2,8,1], index: 6, kind: output, shape index: {1}]   ;;  %s2106_s7 = inlined_call_operand.vmem [shape: f32[2,2,8,1], index: 7, kind: output, shape index: {2}]  }
   0x1   :  { %s1873_s26 = smov 0   ;;  %s1875_s27 = smov 0  }
   0x2   :  { %s1877_s28 = smov 0  }
   0x3 LB: > { %s27_s29 = sadd.s32 1, %s1807_s26  ;;  %s30_s30 = sadd.s32 1, %s1811_s27  ;;  %s1815_s28 = sphi %s1877_s28, %s18_s28   ;;  %s1811_s27 = sphi %s1875_s27, %s2117_s27   ;;  %s1807_s26 = sphi %s1873_s26, %s2116_s26   ;;  %s1803_s25 = sphi %s1871_s25, %s2115_s25   ;;  %s1799_s24 = sphi %s1869_s24, %s2114_s24  }
   0x4   : > { %p28_p0 = scmp.ge.s32.totalorder %s27_s29, 2  ;;  %p1444_p1 = scmp.ge.s32.totalorder %s1815_s28, 1 }
   0x5   : > { %p319_p2 = scmp.lt.s32.totalorder %s1815_s28, 5 }
   0x6   : > { %s2119_s29 = smov (%p28_p0, %s27_s29), 0  ;;  %s2121_s30 = smov (!%p28_p0, %s30_s30), %s1811_s27 }
   0x7   : > { %p320_p3 = pnand %p1444_p1, %p319_p2  ;;  %p32_p4 = scmp.ge.s32.totalorder %s2121_s30, 2 }
   0x8   : > { %s1466_s8 = sshll.u32 (!%p320_p3), %s1799_s24, 7  ;;  %v460_v0 = vlaneseq (!%p320_p3)  ;;  %v468_v1 = vld [vmem:[%s2103_s4] sm:$0x1] (!%p320_p3)  ;;  %v469_v3 = vld [vmem:[%s2103_s4 + $0x1] sm:$0x1] (!%p320_p3)  ;;  %v1817_v5 = vmov (!%p320_p3), 0.0  }
   0x9   : > { %s2123_s30 = smov (%p32_p4, %s2121_s30), 0  ;;  %323 = sbr.rel (%p320_p3) target bundleno = 867 (0x363), region = 40 }
   0xa   : > { %v462_v2 = vstv (!%p320_p3), %s1466_s8  ;;  %v677_v4 = vpack.c.bf16 (!%p320_p3), %v468_v1, %v468_v1  ;;  %1546 = vmatprep.subr.bf16.mxu0 (!%p320_p3), %v1817_v5  ;;  %1540 = vmatprep.subr.bf16.mxu1 (!%p320_p3), %v1817_v5  ;;  %v461_v6 = vand.u32 (!%p320_p3), 127, %v460_v0  ;;  %v476_v7 = vshrl.u32 (!%p320_p3), %v460_v0, 7  ;;  %s1818_s13 = smov (!%p320_p3), 127   ;;  %s1819_s14 = smov (!%p320_p3), 1   ;;  %v485_v54 = vld [vmem:[%s2102_s3] sm:$0xf] (!%p320_p3) }
   0xb   : > { %v797_v8 = vpack.c.bf16 (!%p320_p3), %v469_v3, %v469_v3  ;;  %s2107_s15 = smov (!%p320_p3), 111   ;;  %s2109_s16 = smov (!%p320_p3), 113   ;;  %vm1822_vm2 = vmmov (!%p320_p3), 0   ;;  %vm557_vm3 = vcmask (!%p320_p3), 138240   ;;  %vm507_vm4 = vcmask (!%p320_p3), 1041408  }
   0xc   : > { %v679_v9 = vpack.i.b16 (!%p320_p3), %v677_v4, %v677_v4  ;;  %v463_v10 = vadd.s32 (!%p320_p3), %v462_v2, %v461_v6  ;;  %v477_v11 = vsub.s32 (!%p320_p3), 0, %v476_v7  ;;  %s1447_s17 = sadd.s32 (!%p320_p3), 4294967295, %s1799_s24  ;;  %p395_p5 = scmp.lt.s32.totalorder (!%p320_p3), %s1803_s25, 1  ;;  %1548 = vmatprep.mubr.msk.bf16.mxu0 (!%p320_p3), %vm1822_vm2, %v1817_v5  ;;  %1542 = vmatprep.mubr.msk.bf16.mxu1 (!%p320_p3), %vm1822_vm2, %v1817_v5  ;;  %vm503_vm5 = vcmask (!%p320_p3), 31744   ;;  %v1470_v6 = vld [vmem:[%s2102_s3 + $0x8] sm:$0xf] (!%p320_p3) }
   0xd   : > { %v799_v12 = vpack.i.b16 (!%p320_p3), %v797_v8, %v797_v8  ;;  %p404_p6 = scmp.gt.s32.totalorder (!%p320_p3), %s1447_s17, 0  ;;  %p397_p7 = scmp.lt.s32.totalorder (!%p320_p3), %s1799_s24, 1  ;;  %vm628_vm6 = vcmask (!%p320_p3), 121856   ;;  %vm699_vm7 = vcmask (!%p320_p3), 7168   ;;  %vm819_vm8 = vcmask (!%p320_p3), 1039360  }
   0xe   : > { %vm464_vm0 = vcmp.ge.s32.totalorder (!%p320_p3), %v463_v10, 16  ;;  %v684_v13 = vrot.slane (!%p320_p3), %v679_v9, %v477_v11  ;;  %vm466_vm1 = vcmp.lt.s32.totalorder (!%p320_p3), %v463_v10, 240  ;;  %p1448_p8 = scmp.lt.s32.totalorder (!%p320_p3), %s1447_s17, 1  ;;  %s417_s8 = sadd.s32 (!%p320_p3), 1, %s1799_s24  ;;  %vm891_vm9 = vcmask (!%p320_p3), 924672  }
   0xf   : > { %v1913_v14 = vsel (!%p320_p3), %vm464_vm0, 1.0, %v1817_v5  ;;  %v1916_v15 = vsel (!%p320_p3), %vm466_vm1, 1.0, %v1817_v5  ;;  %v804_v18 = vrot.slane (!%p320_p3), %v799_v12, %v477_v11  ;;  %p1945_p9 = scmp.lt.s32.totalorder (!%p320_p3), %s417_s8, 1  ;;  %s1826_s9 = smov (!%p320_p3), 112   ;;  %vm955_vm10 = vcmask (!%p320_p3), 916480  }
  0x10   : > { %v470_v16 = vmul.f32 %v468_v1, %v1913_v14  ;;  %v605_v17 = vmul.f32 %v469_v3, %v1913_v14  ;;  %686 = vrot.lane.b32.xlu1 %v684_v13, %s1818_s13  ;;  %v868_v19 = vmul.f32 %v468_v1, %v1916_v15  ;;  %v1004_v29 = vmul.f32 %v469_v3, %v1916_v15  ;;  %s2125_s25 = smov (!%p395_p5, %s1803_s25), 1  ;;  %s2127_s17 = smov (!%p404_p6, %s1447_s17), 0  ;;  %v1472_v13 = vld [vmem:[%s2102_s3 + $0xc] sm:$0xf] }
  0x11   : > { %s398_s18 = scalar_select %p397_p7, %s1799_s24, 1  ;;  %v940_v41 = vpack.c.bf16 %v1916_v15, %v1916_v15  ;;  %v486_v43 = vpack.c.bf16 %v1913_v14, %v1913_v14  ;;  %vm501_vm11 = vcmask 130048   ;;  %vm1027_vm12 = vcmask 908288  }
  0x12   : > { %v471_v20 = vpack.c.bf16 %v470_v16, %v470_v16  ;;  %v606_v21 = vpack.c.bf16 %v605_v17, %v605_v17  ;;  %v869_v22 = vpack.c.bf16 %v868_v19, %v868_v19  ;;  %v1005_v30 = vpack.c.bf16 %v1004_v29, %v1004_v29  ;;  %s1931_s19 = sshll.u32 %s2125_s25, 1  ;;  %s2129_s17 = smov (!%p1448_p8, %s2127_s17), 1 }
  0x13   : > { %s1934_s20 = sadd.s32 %s1931_s19, %s398_s18  ;;  %s411_s21 = sadd.s32 %s2129_s17, %s1931_s19 }
  0x14   : > { %v473_v23 = vpack.i.b16 %v471_v20, %v471_v20  ;;  %v608_v24 = vpack.i.b16 %v606_v21, %v606_v21  ;;  %806 = vrot.lane.b32.xlu1 %v804_v18, %s1819_s14  ;;  %v871_v25 = vpack.i.b16 %v869_v22, %v869_v22  ;;  %v1007_v31 = vpack.i.b16 %v1005_v30, %v1005_v30  ;;  %s1446_s22 = sshll.u32 %s1934_s20, 1  ;;  %s1454_s23 = sshll.u32 %s411_s21, 1  ;;  %v1474_v18 = vld [vmem:[%s2102_s3 + $0x10] sm:$0xf]  ;;  %v1476_v20 = vld [vmem:[%s2102_s3 + $0x14] sm:$0xf] }
  0x15   : > { %s402_s11 = scalar_lea.vmem %s2099_s0, %s1446_s22  ;;  %s2131_s8 = smov (!%p1945_p9, %s417_s8), 1 }
  0x16   : > { %v478_v26 = vrot.slane %v473_v23, %v477_v11  ;;  %v876_v27 = vrot.slane %v871_v25, %v477_v11  ;;  %v613_v28 = vrot.slane %v608_v24, %v477_v11  ;;  %v1012_v32 = vrot.slane %v1007_v31, %v477_v11  ;;  %v1951_v34 = vld [vmem:[%s402_s11] sm:$0x3]  ;;  %s1823_s24 = smov 17   ;;  %s2133_s8 = smov (!%p1945_p9, %s2131_s8), 1  ;;  %v1478_v25 = vld [vmem:[%s2102_s3 + $0x18] sm:$0xf] }
  0x17   : > { %s1825_s18 = smov 16   ;;  %s2113_s11 = smov 111   ;;  %v754_v14 = vsel %vm507_vm4, %v1951_v34, 0 }
  0x18   : > { %480 = vrot.lane.b32.xlu0 %v478_v26, %s2107_s15  ;;  %s1824_s15 = smov 15  }
  0x1c   : > { %615 = vrot.lane.b32.xlu0 %v613_v28, %s2109_s16  ;;  %s413_s16 = scalar_lea.vmem %s2100_s1, %s1454_s23 }
  0x1d   : > { %v1949_v33 = vld [vmem:[%s413_s16] sm:$0x3]  ;;  %s425_s16 = sadd.s32 %s1931_s19, %s2133_s8 }
  0x1e   : > { %s1459_s17 = sshll.u32 %s425_s16, 1 }
  0x1f   : > { %s427_s23 = scalar_lea.vmem %s2101_s2, %s1459_s17 }
  0x20   : > { %v458_v47 = vld [vmem:[%s427_s23] sm:$0x3] }
  0x82   : > { %v687_v42 = vpop.permute.xlu1 %686 }
  0x83   : > { %v689_v44 = vmul.bf16 %v687_v42, %v1949_v33  ;;  %v690_v45 = vmul.bf16 %v687_v42, %v1951_v34  ;;  %v1482_v42 = vld [vmem:[%s2102_s3 + $0x20] sm:$0xf] }
  0x86   : > { %v807_v46 = vpop.permute.xlu1 %806 }
  0x87   : > { %v809_v48 = vmul.bf16 %v807_v46, %v1951_v34  ;;  %v810_v49 = vmul.bf16 %v807_v46, %v458_v47 }
  0x8a   : > { %v481_v35 = vpop.permute.xlu0 %480 }
  0x8b   : > { %v483_v36 = vmul.bf16 %v481_v35, %v1949_v33  ;;  %v484_v37 = vmul.bf16 %v481_v35, %v1951_v34  ;;  %v1467_v35 = vld [vmem:[%s2102_s3 + $0x4] sm:$0xf] }
  0x8d   : > { %553 = vrot.lane.b32.xlu0 %v483_v36, %s1823_s24  ;;  %555 = vrot.lane.b32.xlu1 %v484_v37, %s1823_s24  ;;  %v1827_v37 = vmov 0.0|0.0  }
  0x8e   : > { %v616_v38 = vpop.permute.xlu0 %615 }
  0x8f   : > { %v618_v39 = vmul.bf16 %v616_v38, %v1949_v33  ;;  %v619_v40 = vmul.bf16 %v616_v38, %v1951_v34 }
  0x91   : > { %878 = vrot.lane.b32.xlu0 %v876_v27, %s1824_s15  ;;  %624 = vrot.lane.b32.xlu1 %v618_v39, %s1824_s15  ;;  %v1480_v39 = vld [vmem:[%s2102_s3 + $0x1c] sm:$0xf] }
  0x95   : > { %626 = vrot.lane.b32.xlu0 %v619_v40, %s1824_s15  ;;  %942 = vrot.lane.b32.xlu1 %v940_v41, %s1825_s18  ;;  %v1828_v41 = vmov 1.0|1.0  }
  0x99   : > { %488 = vrot.lane.b32.xlu0 %v486_v43, %s1826_s9  ;;  %695 = vrot.lane.b32.xlu1 %v689_v44, %s1819_s14 }
  0x9d   : > { %697 = vrot.lane.b32.xlu0 %v690_v45, %s1819_s14  ;;  %1014 = vrot.lane.b32.xlu1 %v1012_v32, %s1823_s24  ;;  %s2066_s14 = sshll.u32 %s1934_s20, 3 }
  0x9e   : > { %s438_s12 = scalar_lea.vmem %s2104_s5, %s2066_s14  ;;  %s446_s24 = scalar_lea.vmem %s2105_s6, %s2066_s14 }
  0x9f   : > { %s454_s17 = scalar_lea.vmem %s2106_s7, %s2066_s14 }
  0xa1   : > { %815 = vrot.lane.b32.xlu0 %v809_v48, %s1818_s13  ;;  %817 = vrot.lane.b32.xlu1 %v810_v49, %s1818_s13  ;;  %s2112_s13 = smov 113  }
  0xff   : > { %v554_v50 = vpop.permute.xlu0 %553  ;;  %v556_v51 = vpop.permute.xlu1 %555 }
 0x100   : > { %v558_v52 = vsel %vm557_vm3, %v554_v50, %v556_v51 }
 0x101   : > { %v563_v53 = vsel %vm507_vm4, %v558_v52, 0 }
 0x102   : > { %1547 = vmatpush3.bf16.msra.mxu0 %v563_v53 }
 0x103   : > { %v879_v55 = vpop.permute.xlu0 %878  ;;  %v625_v56 = vpop.permute.xlu1 %624  ;;  %1552 = vmatprep.subr.bf16.mxu0 %v1817_v5 }
 0x104   : > { %v881_v57 = vmul.bf16 %v879_v55, %v1951_v34  ;;  %v882_v58 = vmul.bf16 %v879_v55, %v458_v47 }
 0x105   : > { %1549 = vmatmul.mubr.msk.bf16.vlgmr.msra.gmra.mrb[0].mxu0 %vm503_vm5, %v485_v54 }
 0x106   : > { %887 = vrot.lane.b32.xlu0 %v881_v57, %s2112_s13  ;;  %889 = vrot.lane.b32.xlu1 %v882_v58, %s2112_s13 }
 0x107   : > { %v627_v59 = vpop.permute.xlu0 %626  ;;  %v943_v60 = vpop.permute.xlu1 %942  ;;  %1554 = vmatprep.mubr.msk.bf16.mxu0 %vm1822_vm2, %v1817_v5 }
 0x108   : > { %v629_v61 = vsel %vm628_vm6, %v625_v56, %v627_v59  ;;  %v945_v62 = vmul.bf16 %v943_v60, %v1951_v34  ;;  %v946_v63 = vmul.bf16 %v943_v60, %v458_v47 }
 0x109   : > { %v634_v0 = vsel %vm507_vm4, %v629_v61, 0 }
 0x10a   : > { %1553 = vmatpush3.bf16.msra.mxu0 %v634_v0  ;;  %953 = vrot.lane.b32.xlu1 %v946_v63, %s1826_s9 }
 0x10b   : > { %951 = vrot.lane.b32.xlu0 %v945_v62, %s1826_s9  ;;  %v489_v1 = vpop.permute.xlu0 %488  ;;  %v696_v2 = vpop.permute.xlu1 %695  ;;  %1558 = vmatprep.subr.bf16.mxu0 %v1817_v5 }
 0x10c   : > { %v491_v3 = vmul.bf16 %v489_v1, %v1949_v33  ;;  %v492_v4 = vmul.bf16 %v489_v1, %v1951_v34 }
 0x10e   : > { %499 = vrot.lane.b32.xlu1 %v492_v4, %s1825_s18 }
 0x10f   : > { %v698_v7 = vpop.permute.xlu0 %697  ;;  %497 = vrot.lane.b32.xlu0 %v491_v3, %s1825_s18  ;;  %v1015_v8 = vpop.permute.xlu1 %1014 }
 0x110   : > { %v700_v9 = vsel %vm699_vm7, %v696_v2, %v698_v7  ;;  %v1017_v10 = vmul.bf16 %v1015_v8, %v1951_v34  ;;  %v1018_v11 = vmul.bf16 %v1015_v8, %v458_v47 }
 0x111   : > { %v705_v12 = vsel %vm507_vm4, %v700_v9, 0  ;;  %1555 = vmatmul.mubr.msk.bf16.vlgmr.msra.gmra.mrb[0].mxu0 %vm503_vm5, %v1470_v6 }
 0x112   : > { %1559 = vmatpush3.bf16.msra.mxu0 %v705_v12  ;;  %1025 = vrot.lane.b32.xlu1 %v1018_v11, %s2113_s11 }
 0x113   : > { %1023 = vrot.lane.b32.xlu0 %v1017_v10, %s2113_s11  ;;  %1560 = vmatprep.mubr.msk.bf16.mxu0 %vm1822_vm2, %v1817_v5  ;;  %v816_v15 = vpop.permute.xlu0 %815  ;;  %v818_v16 = vpop.permute.xlu1 %817 }
 0x114   : > { %1564 = vmatprep.subr.bf16.mxu0 %v1817_v5  ;;  %v820_v17 = vsel %vm819_vm8, %v816_v15, %v818_v16 }
 0x115   : > { %v825_v19 = vsel %vm507_vm4, %v820_v17, 0 }
 0x11d   : > { %1561 = vmatmul.mubr.msk.bf16.vlgmr.msra.gmra.mrb[0].mxu0 %vm503_vm5, %v1472_v13 }
 0x11e   : > { %1565 = vmatpush3.bf16.msra.mxu0 %v754_v14  ;;  %1566 = vmatprep.mubr.msk.bf16.mxu0 %vm1822_vm2, %v1817_v5 }
 0x11f   : > { %1570 = vmatprep.subr.bf16.mxu0 %v1817_v5 }
 0x129   : > { %1567 = vmatmul.mubr.msk.bf16.vlgmr.msra.gmra.mrb[0].mxu0 %vm503_vm5, %v1474_v18 }
 0x12a   : > { %1571 = vmatpush3.bf16.msra.mxu0 %v825_v19  ;;  %1572 = vmatprep.mubr.msk.bf16.mxu0 %vm1822_vm2, %v1817_v5 }
 0x12b   : > { %1576 = vmatprep.subr.bf16.mxu0 %v1817_v5 }
 0x135   : > { %1573 = vmatmul.mubr.msk.bf16.vlgmr.msra.gmra.mrb[0].mxu0 %vm503_vm5, %v1476_v20 }
 0x136   : > { %1578 = vmatprep.mubr.msk.bf16.mxu0 %vm1822_vm2, %v1817_v5 }
 0x178   : > { %v888_v21 = vpop.permute.xlu0 %887  ;;  %v890_v22 = vpop.permute.xlu1 %889 }
 0x179   : > { %v892_v23 = vsel %vm891_vm9, %v888_v21, %v890_v22 }
 0x17a   : > { %v897_v24 = vsel %vm507_vm4, %v892_v23, 0 }
 0x17b   : > { %1577 = vmatpush3.bf16.msra.mxu0 %v897_v24 }
 0x17c   : > { %v954_v26 = vpop.permute.xlu1 %953  ;;  %1582 = vmatprep.subr.bf16.mxu0 %v1817_v5 }
 0x17d   : > { %v952_v27 = vpop.permute.xlu0 %951 }
 0x17e   : > { %1579 = vmatmul.mubr.msk.bf16.vlgmr.msra.gmra.mrb[0].mxu0 %vm503_vm5, %v1478_v25  ;;  %v956_v28 = vsel %vm955_vm10, %v952_v27, %v954_v26 }
 0x17f   : > { %v961_v29 = vsel %vm507_vm4, %v956_v28, 0  ;;  %1584 = vmatprep.mubr.msk.bf16.mxu0 %vm1822_vm2, %v1817_v5 }
 0x180   : > { %1583 = vmatpush3.bf16.msra.mxu0 %v961_v29  ;;  %v500_v30 = vpop.permute.xlu1 %499 }
 0x181   : > { %v498_v31 = vpop.permute.xlu0 %497  ;;  %1588 = vmatprep.subr.bf16.mxu0 %v1817_v5 }
 0x182   : > { %v502_v32 = vsel %vm501_vm11, %v498_v31, %v500_v30 }
 0x183   : > { %v509_v33 = vsel %vm507_vm4, %v502_v32, 0 }
 0x184   : > { %1541 = vmatpush3.bf16.msra.mxu1 %v509_v33  ;;  %v1026_v34 = vpop.permute.xlu1 %1025 }
 0x185   : > { %v1024_v36 = vpop.permute.xlu0 %1023  ;;  %1664 = vmatprep.subr.bf16.mxu1 %v1827_v37 }
 0x186   : > { %v1028_v38 = vsel %vm1027_vm12, %v1024_v36, %v1026_v34 }
 0x187   : > { %1543 = vmatmul.mubr.msk.bf16.vlgmr.msra.gmra.mrb[0].mxu1 %vm503_vm5, %v1467_v35  ;;  %v1033_v40 = vsel %vm507_vm4, %v1028_v38, 0 }
 0x188   : > { %1665 = vmatpush3.bf16.msra.mxu1 %v1828_v41  ;;  %1626 = vmatprep.mubr.msk.f32.mxu1 %vm1822_vm2, %v1817_v5 }
 0x189   : > { %1666 = vmatprep.subr.bf16.mxu1 %v1827_v37 }
 0x18a   : > { %1585 = vmatmul.mubr.msk.bf16.vlgmr.msra.gmra.mrb[0].mxu0 %vm503_vm5, %v1480_v39 }
 0x18b   : > { %1589 = vmatpush3.bf16.msra.mxu0 %v1033_v40  ;;  %1590 = vmatprep.mubr.msk.bf16.mxu0 %vm1822_vm2, %v1817_v5 }
 0x18c   : > { %1667 = vmatpush3.bf16.msra.mxu1 %v1828_v41 }
 0x18d   : > { %1668 = vmatprep.subr.bf16.mxu1 %v1827_v37 }
 0x190   : > { %1669 = vmatpush3.bf16.msra.mxu1 %v1828_v41 }
 0x191   : > { %1670 = vmatprep.subr.bf16.mxu1 %v1827_v37 }
 0x194   : > { %1671 = vmatpush3.bf16.msra.mxu1 %v1828_v41 }
 0x195   : > { %1672 = vmatprep.subr.bf16.mxu1 %v1827_v37 }
 0x196   : > { %1591 = vmatmul.mubr.msk.bf16.vlgmr.msra.gmra.mrb[0].mxu0 %vm503_vm5, %v1482_v42 }
 0x198   : > { %1673 = vmatpush3.bf16.msra.mxu1 %v1828_v41 }
 0x199   : > { %1674 = vmatprep.subr.bf16.mxu1 %v1827_v37 }
 0x19c   : > { %1675 = vmatpush3.bf16.msra.mxu1 %v1828_v41 }
 0x19d   : > { %1676 = vmatprep.subr.bf16.mxu1 %v1827_v37 }
 0x1a0   : > { %1677 = vmatpush3.bf16.msra.mxu1 %v1828_v41 }
 0x1a1   : > { %1678 = vmatprep.subr.bf16.mxu1 %v1827_v37 }
 0x1a4   : > { %1679 = vmatpush3.bf16.msra.mxu1 %v1828_v41 }
 0x1a5   : > { %1680 = vmatprep.subr.bf16.mxu1 %v1827_v37 }
 0x25a   : > { %v545_v43 = vpop.f32.mrb[0].mxu1 }
 0x25b   : > { %v1544_v44 = vpop.f32.mrb[1].mxu1 }
 0x25c   : > { %v548_v45 = vpop.f32.mrb[2].mxu1 }
 0x25d   : > { %v1545_v46 = vpop.f32.mrb[3].mxu1 }
 0x269   : > { %v1069_v47 = vpop.f32.mrb[0].mxu0 }
 0x26a   : > { %v1696_v48 = vadd.f32 %v1069_v47, %v545_v43  ;;  %v1592_v49 = vpop.f32.mrb[1].mxu0 }
 0x26b   : > { %v1072_v50 = vpop.f32.mrb[2].mxu0 }
 0x26c   : > { %v1076_v51 = vmax.f32 %v1696_v48, 0.0  ;;  %v1593_v52 = vpop.f32.mrb[3].mxu0 }
 0x26e   : > { %1077 = vst [vmem:[%s438_s12] sm:$0xff] %v1076_v51  ;;  %1627 = vmatmul.mubr.f32.vlgmr.msra.gmra.mrb[4].mxu1 %v1076_v51  ;;  %v1150_v53 = vmul.f32 %v1076_v51, %v1076_v51 }
 0x26f   : > { %1681 = vmatpush3.bf16.msra.mxu1 %v1828_v41  ;;  %1661 = vmatprep.mubr.msk.f32.mxu1 %vm1822_vm2, %v1817_v5 }
 0x270   : > { %1682 = vmatprep.subr.bf16.mxu1 %v1827_v37 }
 0x273   : > { %1683 = vmatpush3.bf16.msra.mxu1 %v1828_v41 }
 0x274   : > { %1684 = vmatprep.subr.bf16.mxu1 %v1827_v37 }
 0x277   : > { %1685 = vmatpush3.bf16.msra.mxu1 %v1828_v41 }
 0x278   : > { %1686 = vmatprep.subr.bf16.mxu1 %v1827_v37 }
 0x27b   : > { %1687 = vmatpush3.bf16.msra.mxu1 %v1828_v41 }
 0x27c   : > { %1688 = vmatprep.subr.bf16.mxu1 %v1827_v37 }
 0x27f   : > { %1689 = vmatpush3.bf16.msra.mxu1 %v1828_v41 }
 0x280   : > { %1690 = vmatprep.subr.bf16.mxu1 %v1827_v37 }
 0x283   : > { %1691 = vmatpush3.bf16.msra.mxu1 %v1828_v41 }
 0x284   : > { %1692 = vmatprep.subr.bf16.mxu1 %v1827_v37 }
 0x287   : > { %1693 = vmatpush3.bf16.msra.mxu1 %v1828_v41 }
 0x288   : > { %1694 = vmatprep.subr.bf16.mxu1 %v1827_v37 }
 0x28b   : > { %1695 = vmatpush3.bf16.msra.mxu1 %v1828_v41 }
 0x28e   : > { %1662 = vmatmul.mubr.f32.vlgmr.msra.gmra.mrb[6].mxu1 %v1150_v53 }
 0x341   : > { %v1144_v5 = vpop.f32.mrb[4].mxu1 }
 0x342   : > { %1149 = vst.msk [vmem:[%s446_s24] sm:$0xff] %vm699_vm7, %v1144_v5  ;;  %v1628_v54 = vpop.f32.mrb[5].mxu1 }
 0x361   : > { %v1217_v55 = vpop.f32.mrb[6].mxu1 }
 0x362   : > { %1221 = vst.msk [vmem:[%s454_s17] sm:$0xff] %vm699_vm7, %v1217_v55  ;;  %v1663_v56 = vpop.f32.mrb[7].mxu1 }
 0x363 PF: > { %s18_s28 = sadd.s32 1, %s1815_s28   ;;  %s2114_s24 = smov %s1807_s26 }
 0x364   : > { %p15_p10 = scmp.ge.s32.totalorder %s18_s28, 6   ;;  %s2115_s25 = smov %s1811_s27 }
 0x365   : > { %s2116_s26 = smov %s2119_s29  ;;  %s2117_s27 = smov %s2123_s30 }
 0x366   :  { %17 = sbr.rel (!%p15_p10) target bundleno = 3 (0x3), region = 108 }

</bundles_post_ra>
